<compile_context>
chip_gen: v6e
topology: v6e:2x2x1
jax: 0.10.0
libtpu: 0.0.40
codegen_flags: <defaults>
</compile_context>

<pallas_src>
from functools import partial

import jax
import jax.numpy as jnp
from jax.experimental import pallas as pl
from jax.experimental.pallas import tpu as pltpu


def _round_up(x, m):
    return (x + m - 1) // m * m


# ---------------------------------------------------------------------------
# Kernel 1: lane-dense pixel normalization for the query path
#   rows = (N*C, H*W)  (pure reshape of NCHW, no transpose), each row gets its
#   own (mean, 1/std) scalar broadcast across the 128-lane axis.
# ---------------------------------------------------------------------------
def _normalize_kernel(x_ref, mean_ref, inv_std_ref, o_ref):
    o_ref[...] = (x_ref[...] - mean_ref[...]) * inv_std_ref[...]


def normalize_images(x_nchw, pixel_mean, pixel_std, tile_cols=2048):
    N, C, H, W = x_nchw.shape
    HW = H * W
    rows = x_nchw.reshape(N * C, HW)

    tile_cols = min(tile_cols, _round_up(HW, 128))
    HWp = _round_up(HW, tile_cols)
    if HWp != HW:
        rows = jnp.pad(rows, ((0, 0), (0, HWp - HW)))

    mean_rows = jnp.tile(pixel_mean, N).reshape(N * C, 1)
    inv_std_rows = jnp.tile(1.0 / pixel_std, N).reshape(N * C, 1)

    out = pl.pallas_call(
        _normalize_kernel,
        out_shape=jax.ShapeDtypeStruct((N * C, HWp), jnp.float32),
        grid=(HWp // tile_cols,),
        in_specs=[
            pl.BlockSpec((N * C, tile_cols), lambda i: (0, i)),
            pl.BlockSpec((N * C, 1), lambda i: (0, 0)),
            pl.BlockSpec((N * C, 1), lambda i: (0, 0)),
        ],
        out_specs=pl.BlockSpec((N * C, tile_cols), lambda i: (0, i)),
        compiler_params=pltpu.CompilerParams(dimension_semantics=("parallel",)),
    )(rows, mean_rows, inv_std_rows)
    return out[:, :HW].reshape(N, C, H, W)


# ---------------------------------------------------------------------------
# Kernel 2: meta_conv1 as im2col + fused bf16 matmul + BN(affine) + ReLU
#   (pixel normalization is pre-folded into weight / bn_bias by the caller)
# ---------------------------------------------------------------------------
def _conv_bn_relu_kernel(p_ref, w_ref, scale_ref, bias_ref, o_ref):
    acc = jnp.dot(p_ref[...], w_ref[...], preferred_element_type=jnp.float32)
    o_ref[...] = jnp.maximum(acc * scale_ref[...] + bias_ref[...], 0.0)


def _im2col_nhwc(xp_nhwc, kh, kw, stride, OH, OW):
    """im2col on an already spatially padded NHWC slab.

    Patch ordering along K is (kh, kw, C), matching a weight reshaped as
    (OC, KH, KW, C) -> (OC, KH*KW*C).
    """
    N = xp_nhwc.shape[0]
    C = xp_nhwc.shape[-1]
    cols = []
    for i in range(kh):
        for j in range(kw):
            cols.append(
                xp_nhwc[:, i:i + stride * OH:stride, j:j + stride * OW:stride, :])
    patches = jnp.stack(cols, axis=3)               # (N, OH, OW, kh*kw, C)
    return patches.reshape(N * OH * OW, kh * kw * C)


def conv_bn_relu(x_nchw, weight_oikk, bn_scale, bn_bias, *, stride=2, pad=3,
                 pad_values=None, tile_rows=512):
    """Bias-free conv + folded BN + ReLU.  weight/scale/bias must already be
    padded to a lane-dense (128) output-channel count.  Output is channels-last
    (N, OH, OW, OCp) f32."""
    N, C, H, W = x_nchw.shape
    OCp, IC, KH, KW = weight_oikk.shape
    assert IC == C

    OH = (H + 2 * pad - KH) // stride + 1
    OW = (W + 2 * pad - KW) // stride + 1

    # Spatial padding with per-channel pad values: padding the RAW image with
    # pixel_mean (and the annotation channel with 0) reproduces zero-padding of
    # the NORMALIZED image, which is what the reference conv sees.
    if pad_values is None:
        pad_values = jnp.zeros((C,), jnp.float32)
    x_nhwc = x_nchw.transpose(0, 2, 3, 1)
    xp = jnp.broadcast_to(pad_values.astype(jnp.float32),
                          (N, H + 2 * pad, W + 2 * pad, C))
    xp = xp.at[:, pad:pad + H, pad:pad + W, :].set(x_nhwc)

    # TODO(synk): im2col is still materialized by plain JAX; gathering the 7x7
    # windows in-kernel (manual halo DMA from the padded NHWC slab) would remove
    # the ~12x HBM write+read amplification of this slab.
    rows = _im2col_nhwc(xp, KH, KW, stride, OH, OW)            # (M, K)
    K = KH * KW * C
    Kp = _round_up(K, 128)                                      # 196 -> 256
    M = rows.shape[0]
    tile_rows = min(tile_rows, _round_up(M, 8))
    Mp = _round_up(M, tile_rows)
    rows = jnp.pad(rows, ((0, Mp - M), (0, Kp - K))).astype(jnp.bfloat16)

    w_mat = weight_oikk.transpose(0, 2, 3, 1).reshape(OCp, K).T  # (K, OCp)
    w_mat = jnp.pad(w_mat, ((0, Kp - K), (0, 0))).astype(jnp.bfloat16)

    out = pl.pallas_call(
        _conv_bn_relu_kernel,
        out_shape=jax.ShapeDtypeStruct((Mp, OCp), jnp.float32),
        grid=(Mp // tile_rows,),
        in_specs=[
            pl.BlockSpec((tile_rows, Kp), lambda i: (i, 0)),
            pl.BlockSpec((Kp, OCp), lambda i: (0, 0)),
            pl.BlockSpec((1, OCp), lambda i: (0, 0)),
            pl.BlockSpec((1, OCp), lambda i: (0, 0)),
        ],
        out_specs=pl.BlockSpec((tile_rows, OCp), lambda i: (i, 0)),
        compiler_params=pltpu.CompilerParams(dimension_semantics=("parallel",)),
    )(rows, w_mat, bn_scale.reshape(1, OCp), bn_bias.reshape(1, OCp))
    return out[:M].reshape(N, OH, OW, OCp)


# ---------------------------------------------------------------------------
# Kernel 3: 3x3 / stride 2 / pad 1 max pool.
#   Tiled over output rows; 9 lane-dense (rows, C) shifted views are reduced
#   with an unrolled chain of VPU jnp.maximum (no (9, C) inner tile, no XLU
#   reduce, no whole-slab VMEM residency).
# ---------------------------------------------------------------------------
def _maxpool_kernel(*refs):
    win_refs, o_ref = refs[:-1], refs[-1]
    m = win_refs[0][...]
    for r in win_refs[1:]:
        m = jnp.maximum(m, r[...])
    o_ref[...] = m


def max_pool_3x3_s2_p1(x_nhwc, tile_rows=512):
    N, H, W, C = x_nhwc.shape
    k, stride, pad = 3, 2, 1
    neg = jnp.finfo(x_nhwc.dtype).min
    xp = jnp.pad(x_nhwc, ((0, 0), (pad, pad), (pad, pad), (0, 0)),
                 constant_values=neg)
    OH = (H + 2 * pad - k) // stride + 1
    OW = (W + 2 * pad - k) // stride + 1
    M = N * OH * OW
    tile_rows = min(tile_rows, _round_up(M, 8))
    Mp = _round_up(M, tile_rows)

    wins = []
    for i in range(k):
        for j in range(k):
            v = xp[:, i:i + stride * OH:stride, j:j + stride * OW:stride, :]
            v = v.reshape(M, C)
            if Mp != M:
                v = jnp.pad(v, ((0, Mp - M), (0, 0)))
            wins.append(v)

    spec = pl.BlockSpec((tile_rows, C), lambda i: (i, 0))
    out = pl.pallas_call(
        _maxpool_kernel,
        out_shape=jax.ShapeDtypeStruct((Mp, C), x_nhwc.dtype),
        grid=(Mp // tile_rows,),
        in_specs=[spec] * (k * k),
        out_specs=pl.BlockSpec((tile_rows, C), lambda i: (i, 0)),
        compiler_params=pltpu.CompilerParams(dimension_semantics=("parallel",)),
    )(*wins)
    return out[:M].reshape(N, OH, OW, C)


# ---------------------------------------------------------------------------
# Kernel 4: global average pool over spatial dims + sigmoid.
#   Tiled reduction over H*W with a VMEM f32 accumulator (init on step 0,
#   divide + sigmoid on the last step).
# ---------------------------------------------------------------------------
def _gap_sigmoid_kernel(x_ref, o_ref, acc_ref, *, inv_count):
    @pl.when(pl.program_id(0) == 0)
    def _():
        acc_ref[...] = jnp.zeros_like(acc_ref)

    acc_ref[...] += jnp.sum(x_ref[...].astype(jnp.float32), axis=1)

    @pl.when(pl.program_id(0) == pl.num_programs(0) - 1)
    def _():
        o_ref[...] = jax.nn.sigmoid(acc_ref[...] * inv_count).astype(o_ref.dtype)


def global_avg_sigmoid(x_nhwc, tile_hw=512):
    N, H, W, C = x_nhwc.shape
    HW = H * W
    flat = x_nhwc.reshape(N, HW, C)
    tile_hw = min(tile_hw, _round_up(HW, 8))
    HWp = _round_up(HW, tile_hw)
    if HWp != HW:
        flat = jnp.pad(flat, ((0, 0), (0, HWp - HW), (0, 0)))   # zeros: no-op for sum

    return pl.pallas_call(
        partial(_gap_sigmoid_kernel, inv_count=1.0 / HW),
        out_shape=jax.ShapeDtypeStruct((N, C), jnp.float32),
        grid=(HWp // tile_hw,),
        in_specs=[pl.BlockSpec((N, tile_hw, C), lambda i: (0, i, 0))],
        out_specs=pl.BlockSpec((N, C), lambda i: (0, 0)),
        scratch_shapes=[pltpu.VMEM((N, C), jnp.float32)],
        compiler_params=pltpu.CompilerParams(dimension_semantics=("arbitrary",)),
    )(flat)


# ---------------------------------------------------------------------------
# Kernel 5: meta loss = mean CrossEntropy(prn_cls_score(x), classes) * coeff
#   Feature dim and class dim are padded to 128 (padded classes get -1e30 bias
#   so the softmax is unchanged); padded feature rows of the weight are zero.
# ---------------------------------------------------------------------------
def _meta_loss_kernel(x_ref, w_ref, b_ref, oh_ref, loss_ref, *, coeff):
    scores = jnp.dot(x_ref[...], w_ref[...],
                     preferred_element_type=jnp.float32) + b_ref[...]
    m = jnp.max(scores, axis=-1, keepdims=True)
    lse = jnp.log(jnp.sum(jnp.exp(scores - m), axis=-1, keepdims=True)) + m
    tgt = jnp.sum(scores * oh_ref[...], axis=-1, keepdims=True)
    loss_ref[...] = (jnp.mean(lse - tgt) * coeff).reshape(1, 1)


def meta_loss(attentive_vectors_padded, w_pad, b_pad, support_classes,
              num_classes_padded, coeff):
    N, Cp = attentive_vectors_padded.shape
    onehot = jax.nn.one_hot(support_classes, num_classes_padded, dtype=jnp.float32)
    out = pl.pallas_call(
        partial(_meta_loss_kernel, coeff=coeff),
        out_shape=jax.ShapeDtypeStruct((1, 1), jnp.float32),
        grid=(1,),
        in_specs=[
            pl.BlockSpec((N, Cp), lambda i: (0, 0)),
            pl.BlockSpec((Cp, num_classes_padded), lambda i: (0, 0)),
            pl.BlockSpec((1, num_classes_padded), lambda i: (0, 0)),
            pl.BlockSpec((N, num_classes_padded), lambda i: (0, 0)),
        ],
        out_specs=pl.BlockSpec((1, 1), lambda i: (0, 0)),
    )(attentive_vectors_padded, w_pad, b_pad.reshape(1, num_classes_padded), onehot)
    return out[0, 0]


# ---------------------------------------------------------------------------
# MetaRCNN-lite: the pieces of the forward pass defined inside MetaRCNN itself
# ---------------------------------------------------------------------------
class MetaRCNNPallas:
    OC = 64        # true meta_conv1 output channels
    OC_PAD = 128   # lane-padded channel count carried through conv/pool/GAP
    NC_PAD = 128   # lane-padded class count for prn_cls_score

    def __init__(self, key, num_classes=8, meta_loss_coeff=0.5):
        k0, k1 = jax.random.split(key, 2)
        self.num_classes = num_classes
        self.meta_loss_coeff = meta_loss_coeff

        # register_buffer('pixel_mean' / 'pixel_std') — detectron2 defaults
        self.pixel_mean = jnp.array([103.530, 116.280, 123.675], jnp.float32)
        self.pixel_std = jnp.array([57.375, 57.120, 58.395], jnp.float32)

        # meta_conv1: Conv2d(4, 64, k=7, s=2, p=3, bias=False) + BN(64)
        self.meta_conv1_w = 0.01 * jax.random.normal(k0, (self.OC, 4, 7, 7),
                                                     jnp.float32)
        eps = 1e-5  # BN in eval/frozen form: scale = g/sqrt(var+eps), bias = b - mean*scale
        gamma = jnp.ones((self.OC,), jnp.float32)
        beta = jnp.zeros((self.OC,), jnp.float32)
        run_mean = jnp.zeros((self.OC,), jnp.float32)
        run_var = jnp.ones((self.OC,), jnp.float32)
        bn_scale = gamma / jnp.sqrt(run_var + eps)
        bn_bias = beta - run_mean * bn_scale

        # Fold pixel normalization of the 3 image channels into the conv:
        #   conv(w, (x - mean)/std) == conv(w/std, x_raw) - sum(w * mean/std)
        # (annotation channel 3 is NOT normalized).  Border padding is handled
        # by padding the raw image with pixel_mean (channel 3 with 0).
        inv_std = 1.0 / self.pixel_std
        w_folded = self.meta_conv1_w.at[:, :3].multiply(inv_std.reshape(1, 3, 1, 1))
        const = -jnp.sum(
            self.meta_conv1_w[:, :3] * (self.pixel_mean * inv_std).reshape(1, 3, 1, 1),
            axis=(1, 2, 3))
        bn_bias = bn_bias + bn_scale * const

        # Pad output channels 64 -> 128 so all downstream tiles are lane-dense.
        ocp = self.OC_PAD
        self.conv_w_folded = jnp.zeros((ocp, 4, 7, 7), jnp.float32).at[:self.OC].set(w_folded)
        self.bn_scale = jnp.zeros((ocp,), jnp.float32).at[:self.OC].set(bn_scale)
        self.bn_bias = jnp.zeros((ocp,), jnp.float32).at[:self.OC].set(bn_bias)
        self.conv_pad_values = jnp.concatenate(
            [self.pixel_mean, jnp.zeros((1,), jnp.float32)])   # (4,)

        # prn_cls_score: Linear(in_features, num_classes), normal(std=0.01), bias=0
        # TODO(synk): in_features is 2048 after the (skipped) ResNet stages; here the
        # feature dim is 64 because the backbone stages are not reproducible.
        self.prn_w = 0.01 * jax.random.normal(k1, (num_classes, self.OC), jnp.float32)
        self.prn_b = jnp.zeros((num_classes,), jnp.float32)
        # Padded (128-feature, 128-class) versions: zero weight rows for padded
        # features, -1e30 bias for padded classes so softmax is unchanged.
        self.prn_w_pad = jnp.zeros((ocp, self.NC_PAD), jnp.float32
                                   ).at[:self.OC, :num_classes].set(self.prn_w.T)
        self.prn_b_pad = jnp.full((self.NC_PAD,), -1e30, jnp.float32
                                  ).at[:num_classes].set(self.prn_b)

    # preprocess_image (query path: lane-dense normalize kernel; support path:
    # normalization folded into the conv.  ImageList padding omitted — all
    # images here already share the same size.)
    def preprocess_image(self, query_images, support_images, support_annos):
        q = normalize_images(query_images, self.pixel_mean, self.pixel_std)
        s4 = jnp.concatenate([support_images, support_annos[:, None, :, :]],
                             axis=1)                              # raw (S,4,H,W)
        return q, s4

    # get_attentive_vector
    def get_attentive_vector(self, support_4ch_nchw):
        x = conv_bn_relu(support_4ch_nchw, self.conv_w_folded, self.bn_scale,
                         self.bn_bias, stride=2, pad=3,
                         pad_values=self.conv_pad_values)         # (S,OH,OW,128)
        x = max_pool_3x3_s2_p1(x)                                 # (S,OH2,OW2,128)
        # TODO(synk): backbone.stages_and_names (ResNet res2..res5) + optional
        # roi_heads.res5 are registry-built modules with no clean standalone
        # Pallas equivalent; treated as identity here.
        vec128 = global_avg_sigmoid(x)                            # (S, 128)
        return vec128

    def forward(self, query_images, support_images, support_annos,
                support_classes):
        # TODO(synk): filter_support / gather_classes are Python list ops over
        # Instances objects; support_classes is passed in directly.
        q_norm, s4 = self.preprocess_image(query_images, support_images,
                                           support_annos)
        # TODO(synk): self.backbone(query_images), proposal_generator (RPN) and
        # roi_heads are external registry modules and are not implemented.
        _ = q_norm

        vec128 = self.get_attentive_vector(s4)                    # (S, 128)
        loss = meta_loss(vec128, self.prn_w_pad, self.prn_b_pad,
                         support_classes, self.NC_PAD, self.meta_loss_coeff)

        cav = vec128[:, :self.OC]                                 # (S, 64)
        # match torch shape (S, C, 1, 1) of get_attentive_vector's return
        return {"meta_loss": loss,
                "class_attentive_vectors": cav[:, :, None, None]}


if __name__ == "__main__":
    key = jax.random.PRNGKey(0)
    k_q, k_s, k_a, k_c, k_m = jax.random.split(key, 5)

    B, S, H, W = 2, 2, 32, 32
    num_classes = 8

    query_images = 255.0 * jax.random.uniform(k_q, (B, 3, H, W), jnp.float32)
    support_images = 255.0 * jax.random.uniform(k_s, (S, 3, H, W), jnp.float32)
    support_annos = (jax.random.uniform(k_a, (S, H, W), jnp.float32) > 0.5
                     ).astype(jnp.float32)
    support_classes = jax.random.randint(k_c, (S,), 0, num_classes)

    model = MetaRCNNPallas(k_m, num_classes=num_classes)
    out = model.forward(query_images, support_images, support_annos,
                        support_classes)
    jax.block_until_ready(out)

    assert out["class_attentive_vectors"].shape == (S, 64, 1, 1)
    assert out["meta_loss"].shape == ()
    print("KERNEL_OK")
</pallas_src>

<mosaic_0001>
module attributes {stable_mosaic.version = 11 : i64} {
  func.func @_normalize_kernel(%arg0: i32, %arg1: memref<6x1024xf32, #tpu.memory_space<vmem>>, %arg2: memref<6x1xf32, #tpu.memory_space<vmem>>, %arg3: memref<6x1xf32, #tpu.memory_space<vmem>>, %arg4: memref<6x1024xf32, #tpu.memory_space<vmem>>) attributes {dimension_semantics = [#tpu.dimension_semantics<parallel>], iteration_bounds = array<i64: 1>, scalar_prefetch = 0 : i64, scratch_operands = 0 : i64, tpu.core_type = #tpu.core_type<tc>, window_params = [{transform_indices = @transform_0, window_bounds = array<i64: 6, 1024>}, {pipeline_mode = #tpu.pipeline_mode<synchronous>, transform_indices = @transform_1, window_bounds = array<i64: 6, 1>}, {pipeline_mode = #tpu.pipeline_mode<synchronous>, transform_indices = @transform_2, window_bounds = array<i64: 6, 1>}, {transform_indices = @transform_3, window_bounds = array<i64: 6, 1024>}]} {
    %c0 = arith.constant 0 : index
    %c0_0 = arith.constant 0 : index
    %0 = vector.load %arg1[%c0, %c0_0] : memref<6x1024xf32, #tpu.memory_space<vmem>>, vector<6x1024xf32>
    %c0_1 = arith.constant 0 : index
    %c0_2 = arith.constant 0 : index
    %1 = vector.load %arg2[%c0_1, %c0_2] : memref<6x1xf32, #tpu.memory_space<vmem>>, vector<6x1xf32>
    %2 = vector.broadcast %1 : vector<6x1xf32> to vector<6x1024xf32>
    %3 = arith.subf %0, %2 : vector<6x1024xf32>
    %c0_3 = arith.constant 0 : index
    %c0_4 = arith.constant 0 : index
    %4 = vector.load %arg3[%c0_3, %c0_4] : memref<6x1xf32, #tpu.memory_space<vmem>>, vector<6x1xf32>
    %5 = vector.broadcast %4 : vector<6x1xf32> to vector<6x1024xf32>
    %6 = arith.mulf %3, %5 : vector<6x1024xf32>
    %c0_5 = arith.constant 0 : index
    %c0_6 = arith.constant 0 : index
    %7 = vector.load %arg4[%c0_5, %c0_6] : memref<6x1024xf32, #tpu.memory_space<vmem>>, vector<6x1024xf32>
    tpu.vector_store %arg4[%c0_5, %c0_6], %6 {strides = array<i32>} : memref<6x1024xf32, #tpu.memory_space<vmem>>, vector<6x1024xf32>,
    return
  }
  func.func @transform_0(%arg0: i32) -> (i32, i32) {
    %c0_i32 = arith.constant 0 : i32
    %c0_i32_0 = arith.constant 0 : i32
    return %c0_i32, %arg0 : i32, i32
  }
  func.func @transform_1(%arg0: i32) -> (i32, i32) {
    %c0_i32 = arith.constant 0 : i32
    %c0_i32_0 = arith.constant 0 : i32
    %c0_i32_1 = arith.constant 0 : i32
    return %c0_i32, %c0_i32_0 : i32, i32
  }
  func.func @transform_2(%arg0: i32) -> (i32, i32) {
    %c0_i32 = arith.constant 0 : i32
    %c0_i32_0 = arith.constant 0 : i32
    %c0_i32_1 = arith.constant 0 : i32
    return %c0_i32, %c0_i32_0 : i32, i32
  }
  func.func @transform_3(%arg0: i32) -> (i32, i32) {
    %c0_i32 = arith.constant 0 : i32
    %c0_i32_0 = arith.constant 0 : i32
    return %c0_i32, %arg0 : i32, i32
  }
}

</mosaic_0001>

<bundles_post_ra>
// kernel: tpu_custom_call.1
= control target key start
LH: loop header
LB: loop body
LE: loop exit
PB: predicated region body
PF: predicated region fallthrough
CT: control target
= control target key end

     0   :  { %8 = vsyncpa [#allocation3], 0  ;;  %s169_s0 = inlined_call_operand.hbm [shape: f32[6,1024], index: 0, kind: input, shape index: {}]   ;;  %s170_s1 = inlined_call_operand.vmem [shape: f32[6,1], index: 1, kind: input, shape index: {}]   ;;  %s171_s2 = inlined_call_operand.vmem [shape: f32[6,1], index: 2, kind: input, shape index: {}]   ;;  %s172_s3 = inlined_call_operand.hbm [shape: f32[6,1024], index: 3, kind: output, shape index: {}]  }
   0x1   :  { %9 = vsyncpa [#allocation4], 0  ;;  %s134_s12 = smov [#allocation2]  }
   0x2   :  { %s16_s13 = sshll.u32 %s134_s12, 4  ;;  %s17_s13 = int_to_ptr.vmem [resolvable:$true] %s16_s13 }
   0x3   :  { %s98_s14 = scalar_lea.vmem %s17_s13, 1024  ;;  %p103_p1 = scmp.lt.s32.totalorder %s17_s13, %s17_s13 }
   0x4   :  { %p99_p0 = scmp.ne.s32.totalorder %s17_s13, %s98_s14  ;;  %p104_p2 = scmp.lt.s32.totalorder %s98_s14, %s98_s14 }
   0x6   :  { %p105_p3 = por %p104_p2, %p103_p1 }
   0x8   :  { %p106_p4 = pnand %p105_p3, %p99_p0 }
   0xa   :  { %109 = shalt.err (!%p106_p4)
}
   0xb   :  { %19 = dma.hbm_to_vmem [thread:$0]  %s169_s0, 1024, %s17_s13, [#allocation3]  }
   0xc   :  { %130 = dma.done.wait [#allocation3], 1024  }
   0xd   :  { %131 = vsyncadd [#allocation3], 4294966272  ;;  %v135_v0 = vmov 0   ;;  %v35_v1 = vld [vmem:[%s170_s1] sm:$0x3f]  ;;  %s136_s0 = smov [#allocation5]  }
   0xe   :  { %89 = vset.pattern.permute.xlu0 %v135_v0  ;;  %v49_v2 = vld [vmem:[%s171_s2] sm:$0x3f]  ;;  %v28_v4 = vld [vmem:[#allocation2 + $0x8] sm:$0x3f]  ;;  %v29_v5 = vld [vmem:[#allocation2 + $0x10] sm:$0x3f] }
   0xf   :  { %38 = vperm.xlu0 %89, %v35_v1   ;;  %v27_v3 = vld [vmem:[#allocation2] sm:$0x3f]  ;;  %v30_v7 = vld [vmem:[#allocation2 + $0x18] sm:$0x3f]  ;;  %v32_v9 = vld [vmem:[#allocation2 + $0x28] sm:$0x3f] }
  0x10   :  { %v31_v8 = vld [vmem:[#allocation2 + $0x20] sm:$0x3f]  ;;  %v33_v10 = vld [vmem:[#allocation2 + $0x30] sm:$0x3f]  ;;  %v34_v11 = vld [vmem:[#allocation2 + $0x38] sm:$0x3f] }
  0x11   :  { %s77_s1 = sshll.u32 %s136_s0, 4  ;;  %s78_s1 = int_to_ptr.vmem [resolvable:$true] %s77_s1 }
  0x12   :  { %s110_s2 = scalar_lea.vmem %s78_s1, 1024  ;;  %p115_p6 = scmp.lt.s32.totalorder %s78_s1, %s78_s1 }
  0x13   :  { %52 = vperm.xlu0 %89, %v49_v2   ;;  %p111_p5 = scmp.ne.s32.totalorder %s78_s1, %s110_s2  ;;  %p116_p7 = scmp.lt.s32.totalorder %s110_s2, %s110_s2 }
  0x15   :  { %p117_p8 = por %p116_p7, %p115_p6 }
  0x17   :  { %p118_p9 = pnand %p117_p8, %p111_p5 }
  0x8a   :  { %v39_v6 = vpop.permute.xlu0 %38 }
  0x8b   :  { %v41_v12 = vsub.f32 %v27_v3, %v39_v6  ;;  %v42_v13 = vsub.f32 %v28_v4, %v39_v6  ;;  %v43_v14 = vsub.f32 %v29_v5, %v39_v6  ;;  %v44_v15 = vsub.f32 %v30_v7, %v39_v6 }
  0x8c   :  { %v45_v17 = vsub.f32 %v31_v8, %v39_v6  ;;  %v46_v18 = vsub.f32 %v32_v9, %v39_v6  ;;  %v47_v19 = vsub.f32 %v33_v10, %v39_v6  ;;  %v48_v20 = vsub.f32 %v34_v11, %v39_v6 }
  0x8e   :  { %v53_v16 = vpop.permute.xlu0 %52 }
  0x8f   :  { %v55_v21 = vmul.f32 %v53_v16, %v41_v12  ;;  %v56_v22 = vmul.f32 %v53_v16, %v42_v13  ;;  %v57_v23 = vmul.f32 %v53_v16, %v43_v14  ;;  %v58_v24 = vmul.f32 %v53_v16, %v44_v15 }
  0x90   :  { %v59_v25 = vmul.f32 %v53_v16, %v45_v17  ;;  %v60_v26 = vmul.f32 %v53_v16, %v46_v18  ;;  %v61_v27 = vmul.f32 %v53_v16, %v47_v19  ;;  %v62_v28 = vmul.f32 %v53_v16, %v48_v20 }
  0x91   :  { %63 = vst [vmem:[#allocation5] sm:$0x3f] %v55_v21  ;;  %64 = vst [vmem:[#allocation5 + $0x8] sm:$0x3f] %v56_v22 }
  0x92   :  { %65 = vst [vmem:[#allocation5 + $0x10] sm:$0x3f] %v57_v23  ;;  %66 = vst [vmem:[#allocation5 + $0x18] sm:$0x3f] %v58_v24 }
  0x93   :  { %67 = vst [vmem:[#allocation5 + $0x20] sm:$0x3f] %v59_v25  ;;  %68 = vst [vmem:[#allocation5 + $0x28] sm:$0x3f] %v60_v26 }
  0x94   :  { %69 = vst [vmem:[#allocation5 + $0x30] sm:$0x3f] %v61_v27  ;;  %70 = vst [vmem:[#allocation5 + $0x38] sm:$0x3f] %v62_v28 }
  0x95   :  { %121 = shalt.err (!%p118_p9)
}
  0x96   :  { %80 = dma.vmem_to_hbm [thread:$0]  %s78_s1, 1024, %s172_s3, [#allocation4]  }
  0x97   :  { %132 = dma.done.wait [#allocation4], 1024  }
  0x98   :  { %133 = vsyncadd [#allocation4], 4294966272 }
  0x99   :  { %84 = vsyncpa [#allocation3], 1 }
  0x9a   :  { %85 = vsyncpa [#allocation4], 1 }

</bundles_post_ra>
